<compile_context>
chip_gen: v6e
topology: v6e:2x2x1
jax: 0.10.0
libtpu: 0.0.40
codegen_flags: <defaults>
</compile_context>

<pallas_src>
import functools

import jax
import jax.numpy as jnp
from jax.experimental import pallas as pl
from jax.experimental.pallas import tpu as pltpu

_MIB = 1024 * 1024


def _round_up(x, m):
    return (x + m - 1) // m * m


def _gated_conv_kernel(p_ref, w_ref, o_ref, *, co_pad):
    # p_ref: (TM, K_pad)        bf16 im2col patches (+ ones column for the bias)
    # w_ref: (K_pad, 2*co_pad)  bf16 fused [conv | mask] weights (+ bias row)
    # o_ref: (TM, co_pad)       bf16 gated + LeakyReLU(0.2) output
    acc = jnp.dot(p_ref[...], w_ref[...], preferred_element_type=jnp.float32)
    conv = acc[:, :co_pad]                        # lane-aligned split of fused result
    mask = acc[:, co_pad:]
    gate = 0.5 * jnp.tanh(0.5 * mask) + 0.5       # exact sigmoid, single EUP push
    gated = conv * gate
    out = jnp.where(gated >= 0.0, gated, 0.2 * gated)   # LeakyReLU(0.2)
    o_ref[...] = out.astype(o_ref.dtype)


def _vmem_budget_and_limit():
    """Generation-aware (v5e/v6e: 128 MiB VMEM, v7x: 64 MiB) tile budget + limit."""
    try:
        phys = int(pltpu.get_tpu_info().vmem_capacity_bytes)
    except Exception:
        phys = 64 * _MIB                       # conservative (v7x-sized) fallback
    limit = max(32 * _MIB, min(phys // 2 + 32 * _MIB, phys - 24 * _MIB))
    budget = max(16 * _MIB, limit - 8 * _MIB)
    return budget, limit


def _pick_block_m(m, k_pad, co_pad, vmem_budget_bytes):
    """Largest M-tile whose footprint (I/O tiles + f32 acc/epilogue temps + the
    resident weight) fits the budget, then capped so the grid keeps multiple
    balanced tiles (v7x megacore, DMA/compute overlap) without tiny tiles."""
    weight_bytes = k_pad * (2 * co_pad) * 2        # bf16, single-buffered
    per_row = (
        2 * (k_pad * 2)          # bf16 patch tile, double-buffered
        + 2 * (co_pad * 2)       # bf16 output tile, double-buffered
        + (2 * co_pad) * 4       # f32 fused accumulator
        + 2 * (co_pad * 4)       # gate / gated f32 temporaries
    )
    tm = 2048
    while tm > 256 and weight_bytes + tm * per_row > vmem_budget_bytes:
        tm //= 2
    # >= ~8 grid steps when M is large, but keep tiles >= 512 rows (HBM roofline
    # knee) and never bigger than the (rounded) problem size.
    cap = max(512, _round_up((m + 7) // 8, 256))
    tm = min(tm, cap, _round_up(m, 256))
    return max(tm, 256)


def gated_conv2d_v2(x, w_conv, b_conv, w_mask, b_mask, *, padding=1, stride=1):
    """x: (N, C_in, H, W) float32. Weights: (C_out, C_in, KH, KW). Biases: (C_out,)."""
    N, Cin, H, W = x.shape
    Cout, _, KH, KW = w_conv.shape

    # --- glue: NHWC + bf16 once (1x activation pass), then reflection pad ---
    xh = jnp.transpose(x, (0, 2, 3, 1)).astype(jnp.bfloat16)        # (N, H, W, Cin)
    if padding > 0:
        xh = jnp.pad(xh, ((0, 0), (padding, padding), (padding, padding), (0, 0)),
                     mode="reflect")
    Hp, Wp = xh.shape[1], xh.shape[2]
    OH = (Hp - KH) // stride + 1
    OW = (Wp - KW) // stride + 1

    M = N * OH * OW
    K = Cin * KH * KW
    K_pad = _round_up(K + 1, 128)            # +1 ones column for the folded bias
    Co_pad = _round_up(Cout, 128)

    vmem_budget, vmem_limit = _vmem_budget_and_limit()
    TM = _pick_block_m(M, K_pad, Co_pad, vmem_budget)
    M_pad = _round_up(M, TM)
    grid_m = M_pad // TM

    # --- glue: im2col built directly in bf16, column order (kh, kw, ci). NHWC
    # slicing keeps the big patch matrix contiguous (no (M,K)-sized transpose);
    # the tiny weight is reordered to match instead. The ones (bias) column and
    # the K-pad zero columns ride in the same single concatenate.
    # TODO(synk): move this extraction into the kernel (halo'd row-band DMA) to
    # cut input-side HBM traffic ~KH*KW x.
    cols = []
    for kh in range(KH):
        for kw in range(KW):
            cols.append(xh[:, kh:kh + OH * stride:stride,
                           kw:kw + OW * stride:stride, :])
    cols.append(jnp.ones((N, OH, OW, 1), jnp.bfloat16))              # bias column
    if K_pad - (K + 1) > 0:
        cols.append(jnp.zeros((N, OH, OW, K_pad - (K + 1)), jnp.bfloat16))
    p = jnp.concatenate(cols, axis=-1).reshape(M, K_pad)
    if M_pad > M:
        p = jnp.pad(p, ((0, M_pad - M), (0, 0)))

    # Fused [conv | mask] weight, (K_pad, 2*Co_pad), rows ordered (kh, kw, ci),
    # bias folded in at row K. Tiny -> reordering/padding it is effectively free.
    def _half(wf, bf):
        w2 = jnp.transpose(wf, (2, 3, 1, 0)).reshape(K, Cout)        # (kh,kw,ci) x co
        w2 = jnp.concatenate([w2, bf[None, :]], axis=0)              # bias row
        return jnp.pad(w2, ((0, K_pad - (K + 1)), (0, Co_pad - Cout)))
    wfused = jnp.concatenate([_half(w_conv, b_conv), _half(w_mask, b_mask)],
                             axis=1).astype(jnp.bfloat16)            # (K_pad, 2*Co_pad)

    cost = pl.CostEstimate(
        flops=2 * M_pad * K_pad * (2 * Co_pad),
        transcendentals=M_pad * Co_pad,
        bytes_accessed=(M_pad * K_pad * 2 + K_pad * 2 * Co_pad * 2
                        + M_pad * Co_pad * 2),
    )

    # Resident fused weight: constant index_map; single-buffered when supported.
    try:
        w_spec = pl.BlockSpec((K_pad, 2 * Co_pad), lambda i: (0, 0),
                              pipeline_mode=pl.Buffered(1))
    except Exception:
        w_spec = pl.BlockSpec((K_pad, 2 * Co_pad), lambda i: (0, 0))

    out_flat = pl.pallas_call(
        functools.partial(_gated_conv_kernel, co_pad=Co_pad),
        out_shape=jax.ShapeDtypeStruct((M_pad, Co_pad), jnp.bfloat16),
        grid=(grid_m,),
        in_specs=[
            pl.BlockSpec((TM, K_pad), lambda i: (i, 0)),   # pipelined M-tiles
            w_spec,
        ],
        out_specs=pl.BlockSpec((TM, Co_pad), lambda i: (i, 0)),
        compiler_params=pltpu.CompilerParams(
            dimension_semantics=("parallel",),             # megacore sharding on v7x
            vmem_limit_bytes=vmem_limit,
        ),
        cost_estimate=cost,
    )(p, wfused)

    # back to NCHW f32 (bf16 kernel writeback halves the large padded HBM write).
    out = out_flat[:M, :Cout].reshape(N, OH, OW, Cout)
    return jnp.transpose(out, (0, 3, 1, 2)).astype(jnp.float32)


def _reference(x, w_conv, b_conv, w_mask, b_mask, *, padding=1, stride=1):
    """Pure-JAX f32 reference (lax.conv) for the correctness check."""
    xp = jnp.pad(x, ((0, 0), (0, 0), (padding, padding), (padding, padding)),
                 mode="reflect") if padding > 0 else x
    dn = jax.lax.conv_dimension_numbers(xp.shape, w_conv.shape, ("NCHW", "OIHW", "NCHW"))
    conv = jax.lax.conv_general_dilated(xp, w_conv, (stride, stride), "VALID",
                                        dimension_numbers=dn) + b_conv[None, :, None, None]
    mask = jax.lax.conv_general_dilated(xp, w_mask, (stride, stride), "VALID",
                                        dimension_numbers=dn) + b_mask[None, :, None, None]
    gated = conv * jax.nn.sigmoid(mask)
    return jnp.where(gated >= 0.0, gated, 0.2 * gated)


if __name__ == "__main__":
    # Small deterministic setup: batch=2, in_ch=4, out_ch=8, spatial=16, k=3, pad=1
    key = jax.random.PRNGKey(0)
    k_x, k_wc, k_bc, k_wm, k_bm = jax.random.split(key, 5)

    N, Cin, H, W = 2, 4, 16, 16
    Cout, KH, KW = 8, 3, 3

    x = jax.random.normal(k_x, (N, Cin, H, W), dtype=jnp.float32)
    fan_in = Cin * KH * KW
    scale = 1.0 / jnp.sqrt(jnp.float32(fan_in))
    w_conv = jax.random.uniform(k_wc, (Cout, Cin, KH, KW), jnp.float32, -scale, scale)
    b_conv = jax.random.uniform(k_bc, (Cout,), jnp.float32, -scale, scale)
    w_mask = jax.random.uniform(k_wm, (Cout, Cin, KH, KW), jnp.float32, -scale, scale)
    b_mask = jax.random.uniform(k_bm, (Cout,), jnp.float32, -scale, scale)

    out = gated_conv2d_v2(x, w_conv, b_conv, w_mask, b_mask, padding=1, stride=1)
    out = jax.block_until_ready(out)

    ref = _reference(x, w_conv, b_conv, w_mask, b_mask, padding=1, stride=1)
    assert out.shape == (N, Cout, H, W), out.shape
    # bf16 MXU inputs + bf16 writeback -> looser tolerance than a pure f32 path.
    assert jnp.allclose(out, ref, atol=5e-2, rtol=5e-2), float(jnp.max(jnp.abs(out - ref)))

    # norm='none' (default) -> no normalization applied; sn=False -> plain conv weights.
    print("KERNEL_OK")
</pallas_src>

<mosaic_0001>
module attributes {stable_mosaic.version = 11 : i64} {
  func.func @_gated_conv_kernel(%arg0: i32, %arg1: memref<512x128xbf16, #tpu.memory_space<vmem>>, %arg2: memref<128x256xbf16, #tpu.memory_space<vmem>>, %arg3: memref<512x128xbf16, #tpu.memory_space<vmem>>) attributes {dimension_semantics = [#tpu.dimension_semantics<parallel>], iteration_bounds = array<i64: 1>, scalar_prefetch = 0 : i64, scratch_operands = 0 : i64, tpu.core_type = #tpu.core_type<tc>, window_params = [{transform_indices = @transform_0, window_bounds = array<i64: 512, 128>}, {pipeline_mode = #tpu.pipeline_mode<synchronous>, transform_indices = @transform_1, window_bounds = array<i64: 128, 256>}, {transform_indices = @transform_2, window_bounds = array<i64: 512, 128>}]} {
    %c0 = arith.constant 0 : index
    %c0_0 = arith.constant 0 : index
    %0 = vector.load %arg1[%c0, %c0_0] : memref<512x128xbf16, #tpu.memory_space<vmem>>, vector<512x128xbf16>
    %c0_1 = arith.constant 0 : index
    %c0_2 = arith.constant 0 : index
    %1 = vector.load %arg2[%c0_1, %c0_2] : memref<128x256xbf16, #tpu.memory_space<vmem>>, vector<128x256xbf16>
    %cst = arith.constant dense<0.000000e+00> : vector<512x256xf32>
    %2 = tpu.matmul %0, %1, %cst {dimension_numbers = #tpu.dot_dimension_numbers<[1], [0], [0], [1], [0, 0, 1, 1], [], []>} : vector<512x128xbf16>, vector<128x256xbf16>, vector<512x256xf32> -> vector<512x256xf32>
    %3 = vector.extract_strided_slice %2 {offsets = [0, 0], sizes = [512, 128], strides = [1, 1]} : vector<512x256xf32> to vector<512x128xf32>
    %4 = vector.extract_strided_slice %2 {offsets = [0, 128], sizes = [512, 128], strides = [1, 1]} : vector<512x256xf32> to vector<512x128xf32>
    %cst_3 = arith.constant 5.000000e-01 : f32
    %5 = vector.broadcast %cst_3 : f32 to vector<512x128xf32>
    %6 = arith.mulf %5, %4 : vector<512x128xf32>
    %7 = math.tanh %6 : vector<512x128xf32>
    %cst_4 = arith.constant 5.000000e-01 : f32
    %8 = vector.broadcast %cst_4 : f32 to vector<512x128xf32>
    %9 = arith.mulf %8, %7 : vector<512x128xf32>
    %cst_5 = arith.constant 5.000000e-01 : f32
    %10 = vector.broadcast %cst_5 : f32 to vector<512x128xf32>
    %11 = arith.addf %9, %10 : vector<512x128xf32>
    %12 = arith.mulf %3, %11 : vector<512x128xf32>
    %cst_6 = arith.constant 0.000000e+00 : f32
    %13 = vector.broadcast %cst_6 : f32 to vector<512x128xf32>
    %14 = arith.cmpf oge, %12, %13 : vector<512x128xf32>
    %cst_7 = arith.constant 2.000000e-01 : f32
    %15 = vector.broadcast %cst_7 : f32 to vector<512x128xf32>
    %16 = arith.mulf %15, %12 : vector<512x128xf32>
    %17 = arith.select %14, %12, %16 : vector<512x128xi1>, vector<512x128xf32>
    %18 = arith.truncf %17 : vector<512x128xf32> to vector<512x128xbf16>
    %c0_8 = arith.constant 0 : index
    %c0_9 = arith.constant 0 : index
    %19 = vector.load %arg3[%c0_8, %c0_9] : memref<512x128xbf16, #tpu.memory_space<vmem>>, vector<512x128xbf16>
    tpu.vector_store %arg3[%c0_8, %c0_9], %18 {strides = array<i32>} : memref<512x128xbf16, #tpu.memory_space<vmem>>, vector<512x128xbf16>,
    return
  }
  func.func @transform_0(%arg0: i32) -> (i32, i32) {
    %c0_i32 = arith.constant 0 : i32
    %c0_i32_0 = arith.constant 0 : i32
    return %arg0, %c0_i32 : i32, i32
  }
  func.func @transform_1(%arg0: i32) -> (i32, i32) {
    %c0_i32 = arith.constant 0 : i32
    %c0_i32_0 = arith.constant 0 : i32
    %c0_i32_1 = arith.constant 0 : i32
    return %c0_i32, %c0_i32_0 : i32, i32
  }
  func.func @transform_2(%arg0: i32) -> (i32, i32) {
    %c0_i32 = arith.constant 0 : i32
    %c0_i32_0 = arith.constant 0 : i32
    return %arg0, %c0_i32 : i32, i32
  }
}

</mosaic_0001>

<bundles_post_ra>
// kernel: tpu_custom_call.1
= control target key start
LH: loop header
LB: loop body
LE: loop exit
PB: predicated region body
PF: predicated region fallthrough
CT: control target
= control target key end

     0   :  { %7 = vsyncpa [#allocation3], 0  ;;  %s2542_s0 = inlined_call_operand.hbm [shape: bf16[512,128], index: 0, kind: input, shape index: {}]   ;;  %s2543_s1 = inlined_call_operand.hbm [shape: bf16[128,256], index: 1, kind: input, shape index: {}]   ;;  %s2544_s2 = inlined_call_operand.hbm [shape: bf16[512,128], index: 2, kind: output, shape index: {}]  }
   0x1   :  { %8 = vsyncpa [#allocation6], 0 }
   0x2   :  { %9 = vsyncpa [#allocation4], 0  ;;  %s2237_s9 = smov [#allocation2]  }
   0x3   :  { %s15_s10 = sshll.u32 %s2237_s9, 4  ;;  %s16_s10 = int_to_ptr.vmem [resolvable:$true] %s15_s10 }
   0x4   :  { %s2179_s11 = scalar_lea.vmem %s16_s10, 4096  ;;  %p2184_p1 = scmp.lt.s32.totalorder %s16_s10, %s16_s10 }
   0x5   :  { %p2180_p0 = scmp.ne.s32.totalorder %s16_s10, %s2179_s11  ;;  %p2185_p2 = scmp.lt.s32.totalorder %s2179_s11, %s2179_s11 }
   0x7   :  { %p2186_p3 = por %p2185_p2, %p2184_p1 }
   0x9   :  { %p2187_p4 = pnand %p2186_p3, %p2180_p0 }
   0xb   :  { %2190 = shalt.err (!%p2187_p4)
}
   0xc   :  { %s2238_s12 = smov 64   ;;  %s2239_s13 = smov 4  }
   0xd   :  { %21 = dma.hbm_to_vmem [thread:$0]  %s2542_s0, 4096, %s16_s10, [#allocation3], %s2238_s12, %s2238_s12, %s2239_s13  }
   0xe   :  { %s2240_s16 = smov [#allocation5]  }
   0xf   :  { %s27_s17 = sshll.u32 %s2240_s16, 4  ;;  %s28_s17 = int_to_ptr.vmem [resolvable:$true] %s27_s17 }
  0x10   :  { %s2199_s18 = scalar_lea.vmem %s28_s17, 2048  ;;  %p2204_p6 = scmp.lt.s32.totalorder %s28_s17, %s28_s17 }
  0x11   :  { %p2200_p5 = scmp.ne.s32.totalorder %s28_s17, %s2199_s18  ;;  %p2205_p7 = scmp.lt.s32.totalorder %s2199_s18, %s2199_s18 }
  0x13   :  { %p2206_p8 = por %p2205_p7, %p2204_p6 }
  0x15   :  { %p2207_p9 = pnand %p2206_p8, %p2200_p5 }
  0x17   :  { %2210 = shalt.err (!%p2207_p9)
}
  0x18   :  { %s2241_s19 = smov 128   ;;  %s2242_s20 = smov 8  }
  0x19   :  { %33 = dma.hbm_to_vmem [thread:$0]  %s2543_s1, 2048, %s28_s17, [#allocation6], %s2241_s19, %s2241_s19, %s2242_s20  }
  0x1a   :  { %2231 = dma.done.wait [#allocation3], 4096  }
  0x1b   :  { %2232 = vsyncadd [#allocation3], 4294963200 }
  0x1c   :  { %2233 = dma.done.wait [#allocation6], 2048  }
  0x1d   :  { %2234 = vsyncadd [#allocation6], 4294965248  ;;  %v2243_v0 = vmov 0   ;;  %v1987_v1 = vld [vmem:[#allocation5 + $0x74] ss:$8 sps:$4 sm:$0xff]   ;;  %v2011_v17 = vld [vmem:[#allocation2] sm:$0xff]  }
  0x1e   :  { %425 = vmatprep.mubr.bf16.mxu0 %v2243_v0  ;;  %585 = vmatprep.mubr.bf16.mxu1 %v2243_v0  ;;  %v1989_v2 = vld [vmem:[#allocation5 + $0x70] ss:$8 sps:$4 sm:$0xff]   ;;  %v1990_v3 = vld [vmem:[#allocation5 + $0x64] ss:$8 sps:$4 sm:$0xff]   ;;  %v1992_v4 = vld [vmem:[#allocation5 + $0x60] ss:$8 sps:$4 sm:$0xff]  }
  0x1f   :  { %393 = vmatprep.subr.bf16.mxu0 %v1987_v1  ;;  %1963 = vmatprep.subr.bf16.mxu1 %v1987_v1  ;;  %v1993_v5 = vld [vmem:[#allocation5 + $0x54] ss:$8 sps:$4 sm:$0xff]   ;;  %v1995_v6 = vld [vmem:[#allocation5 + $0x50] ss:$8 sps:$4 sm:$0xff]   ;;  %v1996_v7 = vld [vmem:[#allocation5 + $0x44] ss:$8 sps:$4 sm:$0xff]  }
  0x20   :  { %394 = vmatpush1.bf16.msra.mxu0 %v1989_v2  ;;  %1971 = vmatpush1.bf16.msra.mxu1 %v1989_v2  ;;  %v1998_v8 = vld [vmem:[#allocation5 + $0x40] ss:$8 sps:$4 sm:$0xff]   ;;  %v1999_v9 = vld [vmem:[#allocation5 + $0x34] ss:$8 sps:$4 sm:$0xff]   ;;  %v2001_v10 = vld [vmem:[#allocation5 + $0x30] ss:$8 sps:$4 sm:$0xff]  }
  0x21   :  { %395 = vmatprep.subr.bf16.mxu0 %v1990_v3  ;;  %1964 = vmatprep.subr.bf16.mxu1 %v1990_v3  ;;  %v2002_v11 = vld [vmem:[#allocation5 + $0x24] ss:$8 sps:$4 sm:$0xff]   ;;  %v2004_v12 = vld [vmem:[#allocation5 + $0x20] ss:$8 sps:$4 sm:$0xff]   ;;  %v2005_v13 = vld [vmem:[#allocation5 + $0x14] ss:$8 sps:$4 sm:$0xff]  }
  0x22   :  { %v2007_v14 = vld [vmem:[#allocation5 + $0x10] ss:$8 sps:$4 sm:$0xff]   ;;  %v2008_v15 = vld [vmem:[#allocation5 + $0x4] ss:$8 sps:$4 sm:$0xff]   ;;  %v2010_v16 = vld [vmem:[#allocation5] ss:$8 sps:$4 sm:$0xff]  }
  0x23   :  { %v2012_v18 = vld [vmem:[#allocation2 + $0x80] sm:$0xff]   ;;  %v2013_v19 = vld [vmem:[#allocation2 + $0x8] sm:$0xff]   ;;  %v2015_v21 = vld [vmem:[#allocation2 + $0x10] sm:$0xff]   ;;  %s2244_s0 = smov [#allocation7]  }
  0x24   :  { %396 = vmatpush1.bf16.msra.mxu0 %v1992_v4  ;;  %1972 = vmatpush1.bf16.msra.mxu1 %v1992_v4  ;;  %v2014_v20 = vld [vmem:[#allocation2 + $0x88] sm:$0xff]   ;;  %v2016_v22 = vld [vmem:[#allocation2 + $0x90] sm:$0xff]   ;;  %v2017_v23 = vld [vmem:[#allocation2 + $0x18] sm:$0xff]   ;;  %s1583_s1 = sshll.u32 %s2244_s0, 4  ;;  %s1584_s1 = int_to_ptr.vmem [resolvable:$true] %s1583_s1 }
  0x25   :  { %397 = vmatprep.subr.bf16.mxu0 %v1993_v5  ;;  %1965 = vmatprep.subr.bf16.mxu1 %v1993_v5  ;;  %v2018_v24 = vld [vmem:[#allocation2 + $0x98] sm:$0xff]   ;;  %v2019_v25 = vld [vmem:[#allocation2 + $0x20] sm:$0xff]   ;;  %v2021_v27 = vld [vmem:[#allocation2 + $0x28] sm:$0xff]   ;;  %s2211_s23 = scalar_lea.vmem %s1584_s1, 4096  ;;  %p2216_p11 = scmp.lt.s32.totalorder %s1584_s1, %s1584_s1 }
  0x26   :  { %v2020_v26 = vld [vmem:[#allocation2 + $0xa0] sm:$0xff]   ;;  %v2022_v28 = vld [vmem:[#allocation2 + $0xa8] sm:$0xff]   ;;  %v2023_v29 = vld [vmem:[#allocation2 + $0x30] sm:$0xff]   ;;  %p2212_p10 = scmp.ne.s32.totalorder %s1584_s1, %s2211_s23  ;;  %p2217_p12 = scmp.lt.s32.totalorder %s2211_s23, %s2211_s23 }
  0x27   :  { %v2024_v30 = vld [vmem:[#allocation2 + $0xb0] sm:$0xff]   ;;  %v2025_v31 = vld [vmem:[#allocation2 + $0x38] sm:$0xff]   ;;  %v2027_v33 = vld [vmem:[#allocation2 + $0x40] sm:$0xff]  }
  0x28   :  { %398 = vmatpush1.bf16.msra.mxu0 %v1995_v6  ;;  %1973 = vmatpush1.bf16.msra.mxu1 %v1995_v6  ;;  %v2026_v32 = vld [vmem:[#allocation2 + $0xb8] sm:$0xff]   ;;  %v2028_v34 = vld [vmem:[#allocation2 + $0xc0] sm:$0xff]   ;;  %v2029_v35 = vld [vmem:[#allocation2 + $0x48] sm:$0xff]   ;;  %p2218_p13 = por %p2217_p12, %p2216_p11 }
  0x29   :  { %399 = vmatprep.subr.bf16.mxu0 %v1996_v7  ;;  %1966 = vmatprep.subr.bf16.mxu1 %v1996_v7  ;;  %v2030_v36 = vld [vmem:[#allocation2 + $0xc8] sm:$0xff]   ;;  %v2031_v37 = vld [vmem:[#allocation2 + $0x50] sm:$0xff]   ;;  %v2033_v39 = vld [vmem:[#allocation2 + $0x58] sm:$0xff]  }
  0x2a   :  { %v2032_v38 = vld [vmem:[#allocation2 + $0xd0] sm:$0xff]   ;;  %v2034_v40 = vld [vmem:[#allocation2 + $0xd8] sm:$0xff]   ;;  %v2035_v41 = vld [vmem:[#allocation2 + $0x60] sm:$0xff]   ;;  %p2219_p0 = pnand %p2218_p13, %p2212_p10 }
  0x2b   :  { %v2036_v42 = vld [vmem:[#allocation2 + $0xe0] sm:$0xff]   ;;  %v2037_v43 = vld [vmem:[#allocation2 + $0x68] sm:$0xff]   ;;  %v2039_v45 = vld [vmem:[#allocation2 + $0x70] sm:$0xff]  }
  0x2c   :  { %400 = vmatpush1.bf16.msra.mxu0 %v1998_v8  ;;  %1974 = vmatpush1.bf16.msra.mxu1 %v1998_v8  ;;  %v2038_v44 = vld [vmem:[#allocation2 + $0xe8] sm:$0xff]   ;;  %v2040_v46 = vld [vmem:[#allocation2 + $0xf0] sm:$0xff]   ;;  %v2041_v47 = vld [vmem:[#allocation2 + $0x78] sm:$0xff]  }
  0x2d   :  { %401 = vmatprep.subr.bf16.mxu0 %v1999_v9  ;;  %1967 = vmatprep.subr.bf16.mxu1 %v1999_v9  ;;  %v2042_v48 = vld [vmem:[#allocation2 + $0xf8] sm:$0xff]  }
  0x30   :  { %402 = vmatpush1.bf16.msra.mxu0 %v2001_v10  ;;  %1975 = vmatpush1.bf16.msra.mxu1 %v2001_v10 }
  0x31   :  { %403 = vmatprep.subr.bf16.mxu0 %v2002_v11  ;;  %1968 = vmatprep.subr.bf16.mxu1 %v2002_v11 }
  0x34   :  { %404 = vmatpush1.bf16.msra.mxu0 %v2004_v12  ;;  %1976 = vmatpush1.bf16.msra.mxu1 %v2004_v12 }
  0x35   :  { %405 = vmatprep.subr.bf16.mxu0 %v2005_v13  ;;  %1969 = vmatprep.subr.bf16.mxu1 %v2005_v13 }
  0x38   :  { %406 = vmatpush1.bf16.msra.mxu0 %v2007_v14  ;;  %1977 = vmatpush1.bf16.msra.mxu1 %v2007_v14 }
  0x39   :  { %407 = vmatprep.subr.bf16.mxu0 %v2008_v15  ;;  %1970 = vmatprep.subr.bf16.mxu1 %v2008_v15 }
  0x3c   :  { %408 = vmatpush1.bf16.msra.mxu0 %v2010_v16  ;;  %1978 = vmatpush1.bf16.msra.mxu1 %v2010_v16 }
  0x3f   :  { %426 = vmatmul.mubr.bf16.vlgmr.msra.gmra.mxu0 %v2011_v17  ;;  %586 = vmatmul.mubr.bf16.vlgmr.msra.gmra.mxu1 %v2012_v18 }
  0x40   :  { %435 = vmatprep.mubr.bf16.mxu0 %v2243_v0  ;;  %595 = vmatprep.mubr.bf16.mxu1 %v2243_v0 }
  0x47   :  { %436 = vmatmul.mubr.bf16.gmra.mxu0 %v2013_v19  ;;  %596 = vmatmul.mubr.bf16.gmra.mxu1 %v2014_v20 }
  0x48   :  { %445 = vmatprep.mubr.bf16.mxu0 %v2243_v0  ;;  %605 = vmatprep.mubr.bf16.mxu1 %v2243_v0 }
  0x4f   :  { %446 = vmatmul.mubr.bf16.gmra.mxu0 %v2015_v21  ;;  %606 = vmatmul.mubr.bf16.gmra.mxu1 %v2016_v22 }
  0x50   :  { %455 = vmatprep.mubr.bf16.mxu0 %v2243_v0  ;;  %615 = vmatprep.mubr.bf16.mxu1 %v2243_v0 }
  0x57   :  { %456 = vmatmul.mubr.bf16.gmra.mxu0 %v2017_v23  ;;  %616 = vmatmul.mubr.bf16.gmra.mxu1 %v2018_v24 }
  0x58   :  { %465 = vmatprep.mubr.bf16.mxu0 %v2243_v0  ;;  %625 = vmatprep.mubr.bf16.mxu1 %v2243_v0 }
  0x5f   :  { %466 = vmatmul.mubr.bf16.gmra.mxu0 %v2019_v25  ;;  %626 = vmatmul.mubr.bf16.gmra.mxu1 %v2020_v26 }
  0x60   :  { %475 = vmatprep.mubr.bf16.mxu0 %v2243_v0  ;;  %635 = vmatprep.mubr.bf16.mxu1 %v2243_v0 }
  0x67   :  { %476 = vmatmul.mubr.bf16.gmra.mxu0 %v2021_v27  ;;  %636 = vmatmul.mubr.bf16.gmra.mxu1 %v2022_v28 }
  0x68   :  { %485 = vmatprep.mubr.bf16.mxu0 %v2243_v0  ;;  %645 = vmatprep.mubr.bf16.mxu1 %v2243_v0 }
  0x6f   :  { %486 = vmatmul.mubr.bf16.gmra.mxu0 %v2023_v29  ;;  %646 = vmatmul.mubr.bf16.gmra.mxu1 %v2024_v30 }
  0x70   :  { %495 = vmatprep.mubr.bf16.mxu0 %v2243_v0  ;;  %655 = vmatprep.mubr.bf16.mxu1 %v2243_v0 }
  0x77   :  { %496 = vmatmul.mubr.bf16.gmra.mxu0 %v2025_v31  ;;  %656 = vmatmul.mubr.bf16.gmra.mxu1 %v2026_v32 }
  0x78   :  { %505 = vmatprep.mubr.bf16.mxu0 %v2243_v0  ;;  %665 = vmatprep.mubr.bf16.mxu1 %v2243_v0 }
  0x7f   :  { %506 = vmatmul.mubr.bf16.gmra.mxu0 %v2027_v33  ;;  %666 = vmatmul.mubr.bf16.gmra.mxu1 %v2028_v34 }
  0x80   :  { %515 = vmatprep.mubr.bf16.mxu0 %v2243_v0  ;;  %675 = vmatprep.mubr.bf16.mxu1 %v2243_v0 }
  0x87   :  { %516 = vmatmul.mubr.bf16.gmra.mxu0 %v2029_v35  ;;  %676 = vmatmul.mubr.bf16.gmra.mxu1 %v2030_v36 }
  0x88   :  { %525 = vmatprep.mubr.bf16.mxu0 %v2243_v0  ;;  %685 = vmatprep.mubr.bf16.mxu1 %v2243_v0 }
  0x8f   :  { %526 = vmatmul.mubr.bf16.gmra.mxu0 %v2031_v37  ;;  %686 = vmatmul.mubr.bf16.gmra.mxu1 %v2032_v38 }
  0x90   :  { %535 = vmatprep.mubr.bf16.mxu0 %v2243_v0  ;;  %695 = vmatprep.mubr.bf16.mxu1 %v2243_v0 }
  0x97   :  { %536 = vmatmul.mubr.bf16.gmra.mxu0 %v2033_v39  ;;  %696 = vmatmul.mubr.bf16.gmra.mxu1 %v2034_v40 }
  0x98   :  { %545 = vmatprep.mubr.bf16.mxu0 %v2243_v0  ;;  %705 = vmatprep.mubr.bf16.mxu1 %v2243_v0 }
  0x9f   :  { %546 = vmatmul.mubr.bf16.gmra.mxu0 %v2035_v41  ;;  %706 = vmatmul.mubr.bf16.gmra.mxu1 %v2036_v42 }
  0xa0   :  { %555 = vmatprep.mubr.bf16.mxu0 %v2243_v0  ;;  %715 = vmatprep.mubr.bf16.mxu1 %v2243_v0 }
  0xa7   :  { %556 = vmatmul.mubr.bf16.gmra.mxu0 %v2037_v43  ;;  %716 = vmatmul.mubr.bf16.gmra.mxu1 %v2038_v44 }
  0xa8   :  { %565 = vmatprep.mubr.bf16.mxu0 %v2243_v0  ;;  %725 = vmatprep.mubr.bf16.mxu1 %v2243_v0 }
  0xaf   :  { %566 = vmatmul.mubr.bf16.gmra.mxu0 %v2039_v45  ;;  %726 = vmatmul.mubr.bf16.gmra.mxu1 %v2040_v46 }
  0xb0   :  { %575 = vmatprep.mubr.bf16.mxu0 %v2243_v0  ;;  %735 = vmatprep.mubr.bf16.mxu1 %v2243_v0 }
  0xb7   :  { %576 = vmatmul.mubr.bf16.gmra.mxu0 %v2041_v47  ;;  %736 = vmatmul.mubr.bf16.gmra.mxu1 %v2042_v48 }
  0xff   :  { %v427_v49 = vpop.f32.mrf.mxu0  ;;  %v587_v50 = vpop.f32.mrf.mxu1 }
 0x101   :  { %v429_v51 = vpop.f32.mrf.mxu0  ;;  %v589_v52 = vpop.f32.mrf.mxu1 }
 0x102   :  { %v746_v53 = vmul.f32 0.5, %v429_v51  ;;  %v778_v54 = vmul.f32 0.5, %v589_v52 }
 0x103   :  { %v2301_v55 = vpop.f32.mrf.mxu0  ;;  %v2303_v56 = vpop.f32.mrf.mxu1 }
 0x104   :  { %2043 = vtanh.f32 %v746_v53 }
 0x105   :  { %2045 = vtanh.f32 %v778_v54  ;;  %v433_v57 = vpop.f32.mrf.mxu0  ;;  %v593_v58 = vpop.f32.mrf.mxu1 }
 0x106   :  { %v747_v59 = vmul.f32 0.5, %v433_v57  ;;  %v779_v60 = vmul.f32 0.5, %v593_v58 }
 0x107   :  { %v2305_v61 = vpop.f32.mrf.mxu0  ;;  %v2307_v62 = vpop.f32.mrf.mxu1 }
 0x108   :  { %2047 = vtanh.f32 %v747_v59 }
 0x109   :  { %2049 = vtanh.f32 %v779_v60  ;;  %v439_v63 = vpop.f32.mrf.mxu0  ;;  %v599_v0 = vpop.f32.mrf.mxu1 }
 0x10a   :  { %v748_v1 = vmul.f32 0.5, %v439_v63  ;;  %v780_v2 = vmul.f32 0.5, %v599_v0 }
 0x10b   :  { %v2309_v3 = vpop.f32.mrf.mxu0  ;;  %v2311_v4 = vpop.f32.mrf.mxu1 }
 0x10c   :  { %2051 = vtanh.f32 %v748_v1 }
 0x10d   :  { %2053 = vtanh.f32 %v780_v2  ;;  %v443_v5 = vpop.f32.mrf.mxu0  ;;  %v603_v6 = vpop.f32.mrf.mxu1 }
 0x10e   :  { %v749_v7 = vmul.f32 0.5, %v443_v5  ;;  %v781_v8 = vmul.f32 0.5, %v603_v6 }
 0x10f   :  { %v2313_v9 = vpop.f32.mrf.mxu0  ;;  %v2315_v10 = vpop.f32.mrf.mxu1 }
 0x110   :  { %2055 = vtanh.f32 %v749_v7 }
 0x111   :  { %v2044_v11 = vpop.eup %2043  ;;  %2057 = vtanh.f32 %v781_v8  ;;  %v449_v12 = vpop.f32.mrf.mxu0 }
 0x112   :  { %v609_v13 = vpop.f32.mrf.mxu1  ;;  %v2046_v14 = vpop.eup %2045  ;;  %v874_v15 = vmul.f32 0.5, %v2044_v11  ;;  %v750_v16 = vmul.f32 0.5, %v449_v12 }
 0x113   :  { %v782_v17 = vmul.f32 0.5, %v609_v13  ;;  %v906_v18 = vmul.f32 0.5, %v2046_v14  ;;  %v2317_v19 = vpop.f32.mrf.mxu0 }
 0x114   :  { %v2319_v20 = vpop.f32.mrf.mxu1  ;;  %v938_v21 = vadd.f32 0.5, %v874_v15  ;;  %2059 = vtanh.f32 %v750_v16 }
 0x115   :  { %v2048_v22 = vpop.eup %2047  ;;  %v970_v23 = vadd.f32 0.5, %v906_v18  ;;  %2061 = vtanh.f32 %v782_v17  ;;  %v453_v24 = vpop.f32.mrf.mxu0 }
 0x116   :  { %v613_v25 = vpop.f32.mrf.mxu1  ;;  %v2050_v26 = vpop.eup %2049  ;;  %v1002_v27 = vmul.f32 %v938_v21, %v427_v49  ;;  %v875_v28 = vmul.f32 0.5, %v2048_v22  ;;  %v751_v29 = vmul.f32 0.5, %v453_v24 }
 0x117   :  { %v783_v30 = vmul.f32 0.5, %v613_v25  ;;  %v1034_v31 = vmul.f32 %v970_v23, %v587_v50  ;;  %v907_v32 = vmul.f32 0.5, %v2050_v26  ;;  %v2321_v33 = vpop.f32.mrf.mxu0 }
 0x118   :  { %v2323_v34 = vpop.f32.mrf.mxu1  ;;  %vm1066_vm0 = vcmp.ge.f32.partialorder %v1002_v27, 0.0  ;;  %v1130_v35 = vmul.f32 0.2, %v1002_v27  ;;  %v939_v36 = vadd.f32 0.5, %v875_v28  ;;  %2063 = vtanh.f32 %v751_v29 }
 0x119   :  { %v2052_v37 = vpop.eup %2051  ;;  %vm1098_vm1 = vcmp.ge.f32.partialorder %v1034_v31, 0.0  ;;  %v1162_v38 = vmul.f32 0.2, %v1034_v31  ;;  %v971_v39 = vadd.f32 0.5, %v907_v32  ;;  %2065 = vtanh.f32 %v783_v30  ;;  %v459_v40 = vpop.f32.mrf.mxu0 }
 0x11a   :  { %v619_v41 = vpop.f32.mrf.mxu1  ;;  %v2054_v42 = vpop.eup %2053  ;;  %v1194_v43 = vsel %vm1066_vm0, %v1002_v27, %v1130_v35  ;;  %v1003_v44 = vmul.f32 %v939_v36, %v2301_v55  ;;  %v876_v45 = vmul.f32 0.5, %v2052_v37  ;;  %v752_v46 = vmul.f32 0.5, %v459_v40 }
 0x11b   :  { %v1226_v47 = vsel %vm1098_vm1, %v1034_v31, %v1162_v38  ;;  %v1035_v48 = vmul.f32 %v971_v39, %v2303_v56  ;;  %v908_v49 = vmul.f32 0.5, %v2054_v42  ;;  %v784_v50 = vmul.f32 0.5, %v619_v41  ;;  %v2327_v51 = vpop.f32.mrf.mxu0 }
 0x11c   :  { %v2329_v52 = vpop.f32.mrf.mxu1  ;;  %vm1067_vm2 = vcmp.ge.f32.partialorder %v1003_v44, 0.0  ;;  %v1131_v53 = vmul.f32 0.2, %v1003_v44  ;;  %v940_v54 = vadd.f32 0.5, %v876_v45  ;;  %2067 = vtanh.f32 %v752_v46 }
 0x11d   :  { %v2056_v57 = vpop.eup %2055  ;;  %vm1099_vm3 = vcmp.ge.f32.partialorder %v1035_v48, 0.0  ;;  %v1163_v58 = vmul.f32 0.2, %v1035_v48  ;;  %v972_v59 = vadd.f32 0.5, %v908_v49  ;;  %2069 = vtanh.f32 %v784_v50  ;;  %v463_v55 = vpop.f32.mrf.mxu0 }
 0x11e   :  { %v623_v60 = vpop.f32.mrf.mxu1  ;;  %v2058_v63 = vpop.eup %2057  ;;  %v1195_v0 = vsel %vm1067_vm2, %v1003_v44, %v1131_v53  ;;  %v1004_v56 = vmul.f32 %v940_v54, %v2305_v61  ;;  %v877_v1 = vmul.f32 0.5, %v2056_v57  ;;  %v753_v2 = vmul.f32 0.5, %v463_v55 }
 0x11f   :  { %v1775_v5 = vpack.c.bf16 %v1195_v0, %v1194_v43  ;;  %v1227_v6 = vsel %vm1099_vm3, %v1035_v48, %v1163_v58  ;;  %v1036_v7 = vmul.f32 %v972_v59, %v2307_v62  ;;  %v909_v8 = vmul.f32 0.5, %v2058_v63  ;;  %v2333_v11 = vpop.f32.mrf.mxu0 }
 0x120   :  { %v2335_v12 = vpop.f32.mrf.mxu1  ;;  %v1855_v13 = vpack.c.bf16 %v1227_v6, %v1226_v47  ;;  %vm1068_vm4 = vcmp.ge.f32.partialorder %v1004_v56, 0.0  ;;  %v1132_v14 = vmul.f32 0.2, %v1004_v56  ;;  %v941_v15 = vadd.f32 0.5, %v877_v1 }
 0x121   :  { %v2060_v16 = vpop.eup %2059  ;;  %1776 = vst [vmem:[#allocation7] sm:$0xff] %v1775_v5   ;;  %vm1100_vm5 = vcmp.ge.f32.partialorder %v1036_v7, 0.0  ;;  %v1164_v17 = vmul.f32 0.2, %v1036_v7  ;;  %v973_v61 = vadd.f32 0.5, %v909_v8  ;;  %2071 = vtanh.f32 %v753_v2  ;;  %v469_v18 = vpop.f32.mrf.mxu0 }
 0x122   :  { %v629_v21 = vpop.f32.mrf.mxu1  ;;  %v2062_v22 = vpop.eup %2061  ;;  %1947 = vst [vmem:[#allocation7 + $0x80] sm:$0xff] %v1855_v13   ;;  %v1196_v62 = vsel %vm1068_vm4, %v1004_v56, %v1132_v14  ;;  %v1005_v23 = vmul.f32 %v941_v15, %v2309_v3  ;;  %v878_v24 = vmul.f32 0.5, %v2060_v16  ;;  %v785_v25 = vmul.f32 0.5, %v623_v60 }
 0x123   :  { %v1228_v26 = vsel %vm1100_vm5, %v1036_v7, %v1164_v17  ;;  %v1037_v27 = vmul.f32 %v973_v61, %v2311_v4  ;;  %v910_v28 = vmul.f32 0.5, %v2062_v22  ;;  %v754_v29 = vmul.f32 0.5, %v469_v18  ;;  %v2339_v30 = vpop.f32.mrf.mxu0 }
 0x124   :  { %v2341_v31 = vpop.f32.mrf.mxu1  ;;  %vm1069_vm6 = vcmp.ge.f32.partialorder %v1005_v23, 0.0  ;;  %v1133_v32 = vmul.f32 0.2, %v1005_v23  ;;  %v942_v35 = vadd.f32 0.5, %v878_v24  ;;  %2073 = vtanh.f32 %v785_v25 }
 0x125   :  { %v2064_v36 = vpop.eup %2063  ;;  %vm1101_vm7 = vcmp.ge.f32.partialorder %v1037_v27, 0.0  ;;  %v1165_v37 = vmul.f32 0.2, %v1037_v27  ;;  %v974_v38 = vadd.f32 0.5, %v910_v28  ;;  %2075 = vtanh.f32 %v754_v29  ;;  %v473_v3 = vpop.f32.mrf.mxu0 }
 0x126   :  { %v633_v39 = vpop.f32.mrf.mxu1  ;;  %v2066_v40 = vpop.eup %2065  ;;  %v1197_v41 = vsel %vm1069_vm6, %v1005_v23, %v1133_v32  ;;  %v1006_v4 = vmul.f32 %v942_v35, %v2313_v9  ;;  %v879_v42 = vmul.f32 0.5, %v2064_v36  ;;  %v786_v43 = vmul.f32 0.5, %v629_v21 }
 0x127   :  { %v1780_v44 = vpack.c.bf16 %v1197_v41, %v1196_v62  ;;  %v1229_v45 = vsel %vm1101_vm7, %v1037_v27, %v1165_v37  ;;  %v1038_v46 = vmul.f32 %v974_v38, %v2315_v10  ;;  %v911_v47 = vmul.f32 0.5, %v2066_v40  ;;  %v2345_v48 = vpop.f32.mrf.mxu0 }
 0x128   :  { %v2347_v49 = vpop.f32.mrf.mxu1  ;;  %v1860_v50 = vpack.c.bf16 %v1229_v45, %v1228_v26  ;;  %vm1070_vm8 = vcmp.ge.f32.partialorder %v1006_v4, 0.0  ;;  %v1134_v53 = vmul.f32 0.2, %v1006_v4  ;;  %v943_v54 = vadd.f32 0.5, %v879_v42 }
 0x129   :  { %v2068_v57 = vpop.eup %2067  ;;  %1932 = vst [vmem:[#allocation7 + $0x8] sm:$0xff] %v1780_v44   ;;  %vm1102_vm9 = vcmp.ge.f32.partialorder %v1038_v46, 0.0  ;;  %v1166_v58 = vmul.f32 0.2, %v1038_v46  ;;  %v975_v9 = vadd.f32 0.5, %v911_v47  ;;  %2077 = vtanh.f32 %v786_v43  ;;  %v479_v59 = vpop.f32.mrf.mxu0 }
 0x12a   :  { %v639_v55 = vpop.f32.mrf.mxu1  ;;  %v2070_v60 = vpop.eup %2069  ;;  %1948 = vst [vmem:[#allocation7 + $0x88] sm:$0xff] %v1860_v50   ;;  %v1198_v10 = vsel %vm1070_vm8, %v1006_v4, %v1134_v53  ;;  %v1007_v63 = vmul.f32 %v943_v54, %v2317_v19  ;;  %v880_v0 = vmul.f32 0.5, %v2068_v57  ;;  %v755_v56 = vmul.f32 0.5, %v473_v3 }
 0x12b   :  { %v1230_v1 = vsel %vm1102_vm9, %v1038_v46, %v1166_v58  ;;  %v1039_v2 = vmul.f32 %v975_v9, %v2319_v20  ;;  %v912_v5 = vmul.f32 0.5, %v2070_v60  ;;  %v787_v6 = vmul.f32 0.5, %v633_v39  ;;  %v2351_v7 = vpop.f32.mrf.mxu0 }
 0x12c   :  { %v2353_v8 = vpop.f32.mrf.mxu1  ;;  %vm1071_vm10 = vcmp.ge.f32.partialorder %v1007_v63, 0.0  ;;  %v1135_v13 = vmul.f32 0.2, %v1007_v63  ;;  %v944_v14 = vadd.f32 0.5, %v880_v0  ;;  %2079 = vtanh.f32 %v755_v56 }
 0x12d   :  { %vm1103_vm11 = vcmp.ge.f32.partialorder %v1039_v2, 0.0  ;;  %v1167_v15 = vmul.f32 0.2, %v1039_v2  ;;  %v976_v16 = vadd.f32 0.5, %v912_v5  ;;  %2081 = vtanh.f32 %v787_v6  ;;  %v483_v19 = vpop.f32.mrf.mxu0 }
 0x12e   :  { %v643_v17 = vpop.f32.mrf.mxu1  ;;  %v2072_v61 = vpop.eup %2071  ;;  %v1199_v18 = vsel %vm1071_vm10, %v1007_v63, %v1135_v13  ;;  %v1008_v20 = vmul.f32 %v944_v14, %v2321_v33  ;;  %v756_v21 = vmul.f32 0.5, %v479_v59  ;;  %v788_v22 = vmul.f32 0.5, %v639_v55 }
 0x12f   :  { %v1785_v62 = vpack.c.bf16 %v1199_v18, %v1198_v10  ;;  %v1231_v23 = vsel %vm1103_vm11, %v1039_v2, %v1167_v15  ;;  %v1040_v24 = vmul.f32 %v976_v16, %v2323_v34  ;;  %v881_v25 = vmul.f32 0.5, %v2072_v61  ;;  %v2357_v26 = vpop.f32.mrf.mxu0 }
 0x130   :  { %v2359_v27 = vpop.f32.mrf.mxu1  ;;  %v1865_v28 = vpack.c.bf16 %v1231_v23, %v1230_v1  ;;  %v1136_v29 = vmul.f32 0.2, %v1008_v20  ;;  %2083 = vtanh.f32 %v756_v21  ;;  %vm1072_vm12 = vcmp.ge.f32.partialorder %v1008_v20, 0.0 }
 0x131   :  { %v2074_v32 = vpop.eup %2073  ;;  %1933 = vst [vmem:[#allocation7 + $0x10] sm:$0xff] %v1785_v62   ;;  %v945_v35 = vadd.f32 0.5, %v881_v25  ;;  %2085 = vtanh.f32 %v788_v22  ;;  %v489_v33 = vpop.f32.mrf.mxu0  ;;  %vm1104_vm13 = vcmp.ge.f32.partialorder %v1040_v24, 0.0  ;;  %v757_v34 = vmul.f32 0.5, %v483_v19 }
 0x132   :  { %v649_v36 = vpop.f32.mrf.mxu1  ;;  %v2076_v37 = vpop.eup %2075  ;;  %1949 = vst [vmem:[#allocation7 + $0x90] sm:$0xff] %v1865_v28   ;;  %v913_v38 = vmul.f32 0.5, %v2074_v32  ;;  %v789_v3 = vmul.f32 0.5, %v643_v17  ;;  %v1168_v39 = vmul.f32 0.2, %v1040_v24  ;;  %v758_v4 = vmul.f32 0.5, %v489_v33 }
 0x133   :  { %v1009_v40 = vmul.f32 %v945_v35, %v2327_v51  ;;  %v882_v41 = vmul.f32 0.5, %v2076_v37  ;;  %v2362_v42 = vpop.f32.mrf.mxu0  ;;  %v1200_v44 = vsel %vm1072_vm12, %v1008_v20, %v1136_v29  ;;  %2087 = vtanh.f32 %v757_v34 }
 0x134   :  { %v2364_v43 = vpop.f32.mrf.mxu1  ;;  %v977_v45 = vadd.f32 0.5, %v913_v38  ;;  %v790_v46 = vmul.f32 0.5, %v649_v36  ;;  %2089 = vtanh.f32 %v789_v3  ;;  %v1232_v2 = vsel %vm1104_vm13, %v1040_v24, %v1168_v39 }
 0x135   :  { %vm1073_vm14 = vcmp.ge.f32.partialorder %v1009_v40, 0.0  ;;  %v1137_v47 = vmul.f32 0.2, %v1009_v40  ;;  %v946_v50 = vadd.f32 0.5, %v882_v41  ;;  %v493_v53 = vpop.f32.mrf.mxu0  ;;  %2091 = vtanh.f32 %v758_v4 }
 0x136   :  { %v653_v54 = vpop.f32.mrf.mxu1  ;;  %v2078_v57 = vpop.eup %2077  ;;  %v1041_v51 = vmul.f32 %v977_v45, %v2329_v52  ;;  %v759_v58 = vmul.f32 0.5, %v493_v53  ;;  %2093 = vtanh.f32 %v790_v46 }
 0x137   :  { %v791_v9 = vmul.f32 0.5, %v653_v54  ;;  %v1201_v59 = vsel %vm1073_vm14, %v1009_v40, %v1137_v47  ;;  %v1010_v55 = vmul.f32 %v946_v50, %v2333_v11  ;;  %v914_v60 = vmul.f32 0.5, %v2078_v57  ;;  %v2369_v10 = vpop.f32.mrf.mxu0 }
 0x138   :  { %v2371_v63 = vpop.f32.mrf.mxu1  ;;  %v1790_v0 = vpack.c.bf16 %v1201_v59, %v1200_v44  ;;  %vm1105_vm15 = vcmp.ge.f32.partialorder %v1041_v51, 0.0  ;;  %v1169_v56 = vmul.f32 0.2, %v1041_v51  ;;  %2095 = vtanh.f32 %v759_v58 }
 0x139   :  { %v2080_v1 = vpop.eup %2079  ;;  %v978_v52 = vadd.f32 0.5, %v914_v60  ;;  %2097 = vtanh.f32 %v791_v9  ;;  %v499_v5 = vpop.f32.mrf.mxu0  ;;  %v1138_v17 = vmul.f32 0.2, %v1010_v55  ;;  %vm1074_vm0 = vcmp.ge.f32.partialorder %v1010_v55, 0.0 }
 0x13a   :  { %v659_v6 = vpop.f32.mrf.mxu1  ;;  %v2082_v13 = vpop.eup %2081  ;;  %1934 = vst [vmem:[#allocation7 + $0x18] sm:$0xff] %v1790_v0   ;;  %v1233_v11 = vsel %vm1105_vm15, %v1041_v51, %v1169_v56  ;;  %v883_v14 = vmul.f32 0.5, %v2080_v1  ;;  %v760_v15 = vmul.f32 0.5, %v499_v5 }
 0x13b   :  { %v792_v16 = vmul.f32 0.5, %v659_v6  ;;  %v1870_v19 = vpack.c.bf16 %v1233_v11, %v1232_v2  ;;  %v1042_v61 = vmul.f32 %v978_v52, %v2335_v12  ;;  %v915_v18 = vmul.f32 0.5, %v2082_v13  ;;  %v2375_v20 = vpop.f32.mrf.mxu0 }
 0x13c   :  { %v2377_v21 = vpop.f32.mrf.mxu1  ;;  %v947_v22 = vadd.f32 0.5, %v883_v14  ;;  %2099 = vtanh.f32 %v760_v15  ;;  %v1202_v36 = vsel %vm1074_vm0, %v1010_v55, %v1138_v17 }
 0x13d   :  { %v2084_v62 = vpop.eup %2083  ;;  %1950 = vst [vmem:[#allocation7 + $0x98] sm:$0xff] %v1870_v19   ;;  %vm1106_vm1 = vcmp.ge.f32.partialorder %v1042_v61, 0.0  ;;  %v1170_v23 = vmul.f32 0.2, %v1042_v61  ;;  %v979_v24 = vadd.f32 0.5, %v915_v18  ;;  %2101 = vtanh.f32 %v792_v16  ;;  %v503_v25 = vpop.f32.mrf.mxu0 }
 0x13e   :  { %v663_v28 = vpop.f32.mrf.mxu1  ;;  %v2086_v29 = vpop.eup %2085  ;;  %v1011_v32 = vmul.f32 %v947_v22, %v2339_v30  ;;  %v884_v12 = vmul.f32 0.5, %v2084_v62  ;;  %v761_v35 = vmul.f32 0.5, %v503_v25 }
 0x13f   :  { %v793_v33 = vmul.f32 0.5, %v663_v28  ;;  %v1234_v37 = vsel %vm1106_vm1, %v1042_v61, %v1170_v23  ;;  %v1043_v38 = vmul.f32 %v979_v24, %v2341_v31  ;;  %v916_v34 = vmul.f32 0.5, %v2086_v29  ;;  %v2382_v3 = vpop.f32.mrf.mxu0 }
 0x140   :  { %v2384_v39 = vpop.f32.mrf.mxu1  ;;  %vm1075_vm2 = vcmp.ge.f32.partialorder %v1011_v32, 0.0  ;;  %v1139_v40 = vmul.f32 0.2, %v1011_v32  ;;  %v948_v41 = vadd.f32 0.5, %v884_v12  ;;  %2103 = vtanh.f32 %v761_v35  ;;  %v2088_v4 = vpop.eup %2087 }
 0x141   :  { %vm1107_vm3 = vcmp.ge.f32.partialorder %v1043_v38, 0.0  ;;  %v1171_v30 = vmul.f32 0.2, %v1043_v38  ;;  %v980_v44 = vadd.f32 0.5, %v916_v34  ;;  %2105 = vtanh.f32 %v793_v33  ;;  %v509_v45 = vpop.f32.mrf.mxu0  ;;  %v2090_v47 = vpop.eup %2089 }
 0x142   :  { %v2386_v46 = vpop.f32.mrf.mxu1  ;;  %v1203_v50 = vsel %vm1075_vm2, %v1011_v32, %v1139_v40  ;;  %v1012_v31 = vmul.f32 %v948_v41, %v2345_v48  ;;  %v885_v53 = vmul.f32 0.5, %v2088_v4  ;;  %v2389_v54 = vmul.f32 0.5, %v509_v45  ;;  %v2092_v57 = vpop.eup %2091 }
 0x143   :  { %v1795_v51 = vpack.c.bf16 %v1203_v50, %v1202_v36  ;;  %v1235_v58 = vsel %vm1107_vm3, %v1043_v38, %v1171_v30  ;;  %v1044_v9 = vmul.f32 %v980_v44, %v2347_v49  ;;  %v917_v59 = vmul.f32 0.5, %v2090_v47  ;;  %v2392_v55 = vpop.f32.mrf.mxu0  ;;  %v2094_v0 = vpop.eup %2093 }
 0x144   :  { %v2394_v60 = vpop.f32.mrf.mxu1  ;;  %v1875_v56 = vpack.c.bf16 %v1235_v58, %v1234_v37  ;;  %vm1076_vm4 = vcmp.ge.f32.partialorder %v1012_v31, 0.0  ;;  %v1140_v1 = vmul.f32 0.2, %v1012_v31  ;;  %v949_v2 = vadd.f32 0.5, %v885_v53 }
 0x145   :  { %v2096_v52 = vpop.eup %2095  ;;  %1935 = vst [vmem:[#allocation7 + $0x20] sm:$0xff] %v1795_v51   ;;  %vm1108_vm5 = vcmp.ge.f32.partialorder %v1044_v9, 0.0  ;;  %v1172_v48 = vmul.f32 0.2, %v1044_v9  ;;  %v981_v5 = vadd.f32 0.5, %v917_v59  ;;  %v886_v6 = vmul.f32 0.5, %v2092_v57  ;;  %v2396_v13 = vpop.f32.mrf.mxu0 }
 0x146   :  { %v2398_v11 = vpop.f32.mrf.mxu1  ;;  %v2098_v49 = vpop.eup %2097  ;;  %1951 = vst [vmem:[#allocation7 + $0xa0] sm:$0xff] %v1875_v56   ;;  %v1204_v14 = vsel %vm1076_vm4, %v1012_v31, %v1140_v1  ;;  %v1013_v15 = vmul.f32 %v949_v2, %v2351_v7  ;;  %v918_v16 = vmul.f32 0.5, %v2094_v0  ;;  %v887_v19 = vmul.f32 0.5, %v2096_v52 }
 0x147   :  { %v1236_v17 = vsel %vm1108_vm5, %v1044_v9, %v1172_v48  ;;  %v1045_v61 = vmul.f32 %v981_v5, %v2353_v8  ;;  %v950_v18 = vadd.f32 0.5, %v886_v6  ;;  %v919_v22 = vmul.f32 0.5, %v2098_v49  ;;  %v2402_v62 = vpop.f32.mrf.mxu0 }
 0x148   :  { %v2404_v23 = vpop.f32.mrf.mxu1  ;;  %vm1077_vm6 = vcmp.ge.f32.partialorder %v1013_v15, 0.0  ;;  %v1141_v24 = vmul.f32 0.2, %v1013_v15  ;;  %v982_v25 = vadd.f32 0.5, %v918_v16  ;;  %v951_v28 = vadd.f32 0.5, %v887_v19 }
 0x149   :  { %v2100_v29 = vpop.eup %2099  ;;  %vm1109_vm7 = vcmp.ge.f32.partialorder %v1045_v61, 0.0  ;;  %v1173_v32 = vmul.f32 0.2, %v1045_v61  ;;  %v1014_v7 = vmul.f32 %v950_v18, %v2357_v26  ;;  %v983_v12 = vadd.f32 0.5, %v919_v22  ;;  %v2407_v35 = vpop.f32.mrf.mxu0 }
 0x14a   :  { %v2409_v33 = vpop.f32.mrf.mxu1  ;;  %v2102_v8 = vpop.eup %2101  ;;  %v1205_v36 = vsel %vm1077_vm6, %v1013_v15, %v1141_v24  ;;  %v1046_v37 = vmul.f32 %v982_v25, %v2359_v27  ;;  %v1015_v38 = vmul.f32 %v951_v28, %v2362_v42  ;;  %v888_v34 = vmul.f32 0.5, %v2100_v29 }
 0x14b   :  { %v1800_v40 = vpack.c.bf16 %v1205_v36, %v1204_v14  ;;  %v1237_v41 = vsel %vm1109_vm7, %v1045_v61, %v1173_v32  ;;  %vm1078_vm8 = vcmp.ge.f32.partialorder %v1014_v7, 0.0  ;;  %v1142_v4 = vmul.f32 0.2, %v1014_v7  ;;  %v2413_v30 = vpop.f32.mrf.mxu0 }
 0x14c   :  { %v2415_v44 = vpop.f32.mrf.mxu1  ;;  %v1880_v26 = vpack.c.bf16 %v1237_v41, %v1236_v17  ;;  %vm1110_vm9 = vcmp.ge.f32.partialorder %v1046_v37, 0.0  ;;  %v1174_v45 = vmul.f32 0.2, %v1046_v37  ;;  %vm1079_vm10 = vcmp.ge.f32.partialorder %v1015_v38, 0.0 }
 0x14d   :  { %v2104_v47 = vpop.eup %2103  ;;  %1936 = vst [vmem:[#allocation7 + $0x28] sm:$0xff] %v1800_v40   ;;  %v1206_v50 = vsel %vm1078_vm8, %v1014_v7, %v1142_v4  ;;  %v1143_v31 = vmul.f32 0.2, %v1015_v38  ;;  %v1047_v27 = vmul.f32 %v983_v12, %v2364_v43  ;;  %v952_v42 = vadd.f32 0.5, %v888_v34  ;;  %v523_v53 = vpop.f32.mrf.mxu0 }
 0x14e   :  { %v683_v57 = vpop.f32.mrf.mxu1  ;;  %v2106_v51 = vpop.eup %2105  ;;  %1952 = vst [vmem:[#allocation7 + $0xa8] sm:$0xff] %v1880_v26   ;;  %v1238_v58 = vsel %vm1110_vm9, %v1046_v37, %v1174_v45  ;;  %v920_v9 = vmul.f32 0.5, %v2102_v8  ;;  %v889_v59 = vmul.f32 0.5, %v2104_v47  ;;  %2107 = vtanh.f32 %v2389_v54 }
 0x14f   :  { %v1207_v0 = vsel %vm1079_vm10, %v1015_v38, %v1143_v31  ;;  %vm1111_vm11 = vcmp.ge.f32.partialorder %v1047_v27, 0.0  ;;  %v1175_v56 = vmul.f32 0.2, %v1047_v27  ;;  %v1016_v1 = vmul.f32 %v952_v42, %v2369_v10  ;;  %v2420_v2 = vpop.f32.mrf.mxu0 }
 0x150   :  { %v2422_v52 = vpop.f32.mrf.mxu1  ;;  %v1805_v43 = vpack.c.bf16 %v1207_v0, %v1206_v50  ;;  %v984_v48 = vadd.f32 0.5, %v920_v9  ;;  %v953_v5 = vadd.f32 0.5, %v889_v59  ;;  %v921_v6 = vmul.f32 0.5, %v2106_v51 }
 0x151   :  { %v1239_v49 = vsel %vm1111_vm11, %v1047_v27, %v1175_v56  ;;  %vm1080_vm12 = vcmp.ge.f32.partialorder %v1016_v1, 0.0  ;;  %v1144_v14 = vmul.f32 0.2, %v1016_v1  ;;  %v794_v15 = vmul.f32 0.5, %v2386_v46  ;;  %v529_v16 = vpop.f32.mrf.mxu0 }
 0x152   :  { %v689_v54 = vpop.f32.mrf.mxu1  ;;  %1937 = vst [vmem:[#allocation7 + $0x30] sm:$0xff] %v1805_v43   ;;  %v1885_v19 = vpack.c.bf16 %v1239_v49, %v1238_v58  ;;  %v1048_v17 = vmul.f32 %v984_v48, %v2371_v63  ;;  %v1017_v10 = vmul.f32 %v953_v5, %v2375_v20  ;;  %v985_v61 = vadd.f32 0.5, %v921_v6 }
 0x153   :  { %2109 = vtanh.f32 %v794_v15  ;;  %v763_v18 = vmul.f32 0.5, %v2396_v13  ;;  %v795_v22 = vmul.f32 0.5, %v2398_v11  ;;  %v2429_v24 = vpop.f32.mrf.mxu0  ;;  %v1208_v46 = vsel %vm1080_vm12, %v1016_v1, %v1144_v14 }
 0x154   :  { %v2431_v25 = vpop.f32.mrf.mxu1  ;;  %1953 = vst [vmem:[#allocation7 + $0xb0] sm:$0xff] %v1885_v19   ;;  %v1176_v28 = vmul.f32 0.2, %v1048_v17  ;;  %vm1081_vm13 = vcmp.ge.f32.partialorder %v1017_v10, 0.0  ;;  %v1145_v29 = vmul.f32 0.2, %v1017_v10  ;;  %v1049_v63 = vmul.f32 %v985_v61, %v2377_v21 }
 0x155   :  { %2111 = vtanh.f32 %v763_v18  ;;  %v764_v20 = vmul.f32 0.5, %v2407_v35  ;;  %v796_v32 = vmul.f32 0.5, %v2409_v33  ;;  %v533_v13 = vpop.f32.mrf.mxu0  ;;  %vm1112_vm14 = vcmp.ge.f32.partialorder %v1048_v17, 0.0 }
 0x156   :  { %v693_v7 = vpop.f32.mrf.mxu1  ;;  %v1209_v11 = vsel %vm1081_vm13, %v1017_v10, %v1145_v29  ;;  %2113 = vtanh.f32 %v795_v22  ;;  %v765_v12 = vmul.f32 0.5, %v523_v53  ;;  %vm1113_vm15 = vcmp.ge.f32.partialorder %v1049_v63, 0.0 }
 0x157   :  { %v1810_v8 = vpack.c.bf16 %v1209_v11, %v1208_v46  ;;  %v1177_v36 = vmul.f32 0.2, %v1049_v63  ;;  %2115 = vtanh.f32 %v764_v20  ;;  %v2437_v37 = vpop.f32.mrf.mxu0  ;;  %v797_v21 = vmul.f32 0.5, %v683_v57 }
 0x158   :  { %v2439_v38 = vpop.f32.mrf.mxu1  ;;  %2117 = vtanh.f32 %v796_v32  ;;  %v766_v34 = vmul.f32 0.5, %v529_v16  ;;  %v1240_v35 = vsel %vm1112_vm14, %v1048_v17, %v1176_v28  ;;  %v798_v40 = vmul.f32 0.5, %v689_v54 }
 0x159   :  { %1938 = vst [vmem:[#allocation7 + $0x38] sm:$0xff] %v1810_v8   ;;  %v1241_v33 = vsel %vm1113_vm15, %v1049_v63, %v1177_v36  ;;  %2119 = vtanh.f32 %v765_v12  ;;  %v539_v41 = vpop.f32.mrf.mxu0  ;;  %v767_v45 = vmul.f32 0.5, %v533_v13  ;;  %v799_v50 = vmul.f32 0.5, %v693_v7 }
 0x15a   :  { %v699_v4 = vpop.f32.mrf.mxu1  ;;  %v1890_v26 = vpack.c.bf16 %v1241_v33, %v1240_v35  ;;  %2121 = vtanh.f32 %v797_v21  ;;  %v768_v53 = vmul.f32 0.5, %v539_v41 }
 0x15b   :  { %v2108_v47 = vpop.eup %2107  ;;  %v2441_v31 = vpop.f32.mrf.mxu0  ;;  %2123 = vtanh.f32 %v766_v34  ;;  %v800_v57 = vmul.f32 0.5, %v699_v4 }
 0x15c   :  { %v2443_v27 = vpop.f32.mrf.mxu1  ;;  %1954 = vst [vmem:[#allocation7 + $0xb8] sm:$0xff] %v1890_v26   ;;  %v890_v42 = vmul.f32 0.5, %v2108_v47  ;;  %2125 = vtanh.f32 %v798_v40 }
 0x15d   :  { %v543_v51 = vpop.f32.mrf.mxu0  ;;  %2127 = vtanh.f32 %v767_v45 }
 0x15e   :  { %v703_v58 = vpop.f32.mrf.mxu1  ;;  %v954_v9 = vadd.f32 0.5, %v890_v42  ;;  %v769_v59 = vmul.f32 0.5, %v543_v51  ;;  %2129 = vtanh.f32 %v799_v50 }
 0x15f   :  { %v2445_v0 = vpop.f32.mrf.mxu0  ;;  %2131 = vtanh.f32 %v768_v53  ;;  %v801_v48 = vmul.f32 0.5, %v703_v58 }
 0x160   :  { %v2447_v56 = vpop.f32.mrf.mxu1  ;;  %v2110_v1 = vpop.eup %2109  ;;  %v1018_v43 = vmul.f32 %v954_v9, %v2382_v3  ;;  %2133 = vtanh.f32 %v800_v57 }
 0x161   :  { %v922_v5 = vmul.f32 0.5, %v2110_v1  ;;  %v549_v6 = vpop.f32.mrf.mxu0  ;;  %2135 = vtanh.f32 %v769_v59 }
 0x162   :  { %v709_v49 = vpop.f32.mrf.mxu1  ;;  %v2112_v14 = vpop.eup %2111  ;;  %v1146_v15 = vmul.f32 0.2, %v1018_v43  ;;  %v770_v16 = vmul.f32 0.5, %v549_v6  ;;  %vm1082_vm0 = vcmp.ge.f32.partialorder %v1018_v43, 0.0  ;;  %2137 = vtanh.f32 %v801_v48 }
 0x163   :  { %v2114_v54 = vpop.eup %2113  ;;  %v986_v19 = vadd.f32 0.5, %v922_v5  ;;  %v891_v17 = vmul.f32 0.5, %v2112_v14  ;;  %v802_v10 = vmul.f32 0.5, %v709_v49  ;;  %v2450_v61 = vpop.f32.mrf.mxu0 }
 0x164   :  { %v2452_v18 = vpop.f32.mrf.mxu1  ;;  %v2116_v3 = vpop.eup %2115  ;;  %v923_v22 = vmul.f32 0.5, %v2114_v54  ;;  %2139 = vtanh.f32 %v770_v16  ;;  %v1210_v7 = vsel %vm1082_vm0, %v1018_v43, %v1146_v15 }
 0x165   :  { %v2118_v46 = vpop.eup %2117  ;;  %v1050_v28 = vmul.f32 %v986_v19, %v2384_v39  ;;  %v955_v29 = vadd.f32 0.5, %v891_v17  ;;  %v892_v63 = vmul.f32 0.5, %v2116_v3  ;;  %v2455_v20 = vpop.f32.mrf.mxu0  ;;  %2141 = vtanh.f32 %v802_v10 }
 0x166   :  { %v2457_v32 = vpop.f32.mrf.mxu1  ;;  %v2120_v13 = vpop.eup %2119  ;;  %v987_v11 = vadd.f32 0.5, %v923_v22  ;;  %v924_v12 = vmul.f32 0.5, %v2118_v46 }
 0x167   :  { %v2122_v8 = vpop.eup %2121  ;;  %vm1114_vm1 = vcmp.ge.f32.partialorder %v1050_v28, 0.0  ;;  %v1178_v36 = vmul.f32 0.2, %v1050_v28  ;;  %v1019_v21 = vmul.f32 %v955_v29, %v2392_v55  ;;  %v956_v34 = vadd.f32 0.5, %v892_v63  ;;  %v2461_v39 = vpop.f32.mrf.mxu0 }
 0x168   :  { %v2463_v35 = vpop.f32.mrf.mxu1  ;;  %v1051_v33 = vmul.f32 %v987_v11, %v2394_v60  ;;  %v988_v40 = vadd.f32 0.5, %v924_v12  ;;  %v893_v41 = vmul.f32 0.5, %v2120_v13  ;;  %v925_v4 = vmul.f32 0.5, %v2122_v8  ;;  %v2124_v26 = vpop.eup %2123 }
 0x169   :  { %v1242_v45 = vsel %vm1114_vm1, %v1050_v28, %v1178_v36  ;;  %vm1083_vm2 = vcmp.ge.f32.partialorder %v1019_v21, 0.0  ;;  %v1147_v47 = vmul.f32 0.2, %v1019_v21  ;;  %v1020_v50 = vmul.f32 %v956_v34, %v2402_v62  ;;  %v2467_v42 = vpop.f32.mrf.mxu0  ;;  %v2126_v55 = vpop.eup %2125 }
 0x16a   :  { %v2469_v53 = vpop.f32.mrf.mxu1  ;;  %vm1115_vm3 = vcmp.ge.f32.partialorder %v1051_v33, 0.0  ;;  %v1179_v57 = vmul.f32 0.2, %v1051_v33  ;;  %v1052_v51 = vmul.f32 %v988_v40, %v2404_v23  ;;  %v957_v58 = vadd.f32 0.5, %v893_v41  ;;  %v2128_v60 = vpop.eup %2127 }
 0x16b   :  { %v1211_v9 = vsel %vm1083_vm2, %v1019_v21, %v1147_v47  ;;  %vm1084_vm4 = vcmp.ge.f32.partialorder %v1020_v50, 0.0  ;;  %v1148_v59 = vmul.f32 0.2, %v1020_v50  ;;  %v989_v1 = vadd.f32 0.5, %v925_v4  ;;  %v2472_v43 = vpop.f32.mrf.mxu0  ;;  %v2130_v62 = vpop.eup %2129 }
 0x16c   :  { %v2474_v48 = vpop.f32.mrf.mxu1  ;;  %v1815_v5 = vpack.c.bf16 %v1211_v9, %v1210_v7  ;;  %v1243_v6 = vsel %vm1115_vm3, %v1051_v33, %v1179_v57  ;;  %vm1116_vm5 = vcmp.ge.f32.partialorder %v1052_v51, 0.0  ;;  %v1180_v49 = vmul.f32 0.2, %v1052_v51  ;;  %v2132_v14 = vpop.eup %2131 }
 0x16d   :  { %v1895_v15 = vpack.c.bf16 %v1243_v6, %v1242_v45  ;;  %v1212_v16 = vsel %vm1084_vm4, %v1020_v50, %v1148_v59  ;;  %v1021_v23 = vmul.f32 %v957_v58, %v2413_v30  ;;  %v1053_v54 = vmul.f32 %v989_v1, %v2415_v44  ;;  %v2478_v19 = vpop.f32.mrf.mxu0  ;;  %v2134_v10 = vpop.eup %2133 }
 0x16e   :  { %v2480_v17 = vpop.f32.mrf.mxu1  ;;  %1939 = vst [vmem:[#allocation7 + $0x40] sm:$0xff] %v1815_v5   ;;  %v1244_v3 = vsel %vm1116_vm5, %v1052_v51, %v1180_v49  ;;  %v894_v22 = vmul.f32 0.5, %v2124_v26  ;;  %v926_v46 = vmul.f32 0.5, %v2126_v55  ;;  %v895_v28 = vmul.f32 0.5, %v2128_v60  ;;  %v2136_v29 = vpop.eup %2135 }
 0x16f   :  { %1955 = vst [vmem:[#allocation7 + $0xc0] sm:$0xff] %v1895_v15   ;;  %vm1085_vm6 = vcmp.ge.f32.partialorder %v1021_v23, 0.0  ;;  %v1149_v63 = vmul.f32 0.2, %v1021_v23  ;;  %vm1117_vm7 = vcmp.ge.f32.partialorder %v1053_v54, 0.0  ;;  %v2482_v7 = vpop.f32.mrf.mxu0  ;;  %v927_v8 = vmul.f32 0.5, %v2130_v62  ;;  %v2138_v36 = vpop.eup %2137 }
 0x170   :  { %v1181_v13 = vmul.f32 0.2, %v1053_v54  ;;  %v2484_v30 = vpop.f32.mrf.mxu1  ;;  %v958_v44 = vadd.f32 0.5, %v894_v22  ;;  %v990_v11 = vadd.f32 0.5, %v926_v46  ;;  %v959_v12 = vadd.f32 0.5, %v895_v28 }
 0x171   :  { %v1213_v21 = vsel %vm1085_vm6, %v1021_v23, %v1149_v63  ;;  %v896_v33 = vmul.f32 0.5, %v2132_v14  ;;  %v928_v40 = vmul.f32 0.5, %v2134_v10  ;;  %v2486_v41 = vpop.f32.mrf.mxu0  ;;  %v2140_v26 = vpop.eup %2139  ;;  %v991_v58 = vadd.f32 0.5, %v927_v8 }
 0x172   :  { %v1245_v34 = vsel %vm1117_vm7, %v1053_v54, %v1181_v13  ;;  %v2488_v4 = vpop.f32.mrf.mxu1  ;;  %v1820_v45 = vpack.c.bf16 %v1213_v21, %v1212_v16  ;;  %v1022_v50 = vmul.f32 %v958_v44, %v2420_v2  ;;  %v1054_v55 = vmul.f32 %v990_v11, %v2422_v52  ;;  %v2142_v57 = vpop.eup %2141 }
 0x173   :  { %v1900_v47 = vpack.c.bf16 %v1245_v34, %v1244_v3  ;;  %v1023_v51 = vmul.f32 %v959_v12, %v2429_v24  ;;  %v960_v60 = vadd.f32 0.5, %v896_v33  ;;  %v2493_v9 = vpop.f32.mrf.mxu0  ;;  %v992_v62 = vadd.f32 0.5, %v928_v40 }
 0x174   :  { %v2495_v59 = vpop.f32.mrf.mxu1  ;;  %1940 = vst [vmem:[#allocation7 + $0x48] sm:$0xff] %v1820_v45   ;;  %vm1086_vm8 = vcmp.ge.f32.partialorder %v1022_v50, 0.0  ;;  %v1150_v1 = vmul.f32 0.2, %v1022_v50  ;;  %v1182_v5 = vmul.f32 0.2, %v1054_v55  ;;  %v1055_v2 = vmul.f32 %v991_v58, %v2431_v25 }
 0x175   :  { %1956 = vst [vmem:[#allocation7 + $0xc8] sm:$0xff] %v1900_v47   ;;  %vm1087_vm9 = vcmp.ge.f32.partialorder %v1023_v51, 0.0  ;;  %v1151_v6 = vmul.f32 0.2, %v1023_v51  ;;  %v573_v52 = vpop.f32.mrf.mxu0  ;;  %vm1118_vm10 = vcmp.ge.f32.partialorder %v1054_v55, 0.0  ;;  %v1024_v24 = vmul.f32 %v960_v60, %v2437_v37 }
 0x176   :  { %v897_v49 = vmul.f32 0.5, %v2136_v29  ;;  %v771_v14 = vmul.f32 0.5, %v2455_v20  ;;  %v733_v15 = vpop.f32.mrf.mxu1  ;;  %v1214_v16 = vsel %vm1086_vm8, %v1022_v50, %v1150_v1  ;;  %vm1119_vm11 = vcmp.ge.f32.partialorder %v1055_v2, 0.0 }
 0x177   :  { %v1215_v23 = vsel %vm1087_vm9, %v1023_v51, %v1151_v6  ;;  %v1183_v54 = vmul.f32 0.2, %v1055_v2  ;;  %v1056_v3 = vmul.f32 %v992_v62, %v2439_v38  ;;  %v803_v22 = vmul.f32 0.5, %v2457_v32  ;;  %v2502_v13 = vpop.f32.mrf.mxu0 }
 0x178   :  { %v1825_v10 = vpack.c.bf16 %v1215_v23, %v1214_v16  ;;  %v1246_v46 = vsel %vm1118_vm10, %v1054_v55, %v1182_v5  ;;  %v961_v25 = vadd.f32 0.5, %v897_v49  ;;  %v929_v63 = vmul.f32 0.5, %v2138_v36  ;;  %v2504_v20 = vpop.f32.mrf.mxu1 }
 0x179   :  { %v1247_v28 = vsel %vm1119_vm11, %v1055_v2, %v1183_v54  ;;  %v1152_v29 = vmul.f32 0.2, %v1024_v24  ;;  %vm1088_vm12 = vcmp.ge.f32.partialorder %v1024_v24, 0.0  ;;  %2143 = vtanh.f32 %v771_v14  ;;  %v579_v21 = vpop.f32.mrf.mxu0 }
 0x17a   :  { %1941 = vst [vmem:[#allocation7 + $0x50] sm:$0xff] %v1825_v10   ;;  %v1905_v37 = vpack.c.bf16 %v1247_v28, %v1246_v46  ;;  %v1025_v44 = vmul.f32 %v961_v25, %v2441_v31  ;;  %v993_v11 = vadd.f32 0.5, %v929_v63  ;;  %vm1120_vm13 = vcmp.ge.f32.partialorder %v1056_v3, 0.0  ;;  %v739_v40 = vpop.f32.mrf.mxu1 }
 0x17b   :  { %v1184_v38 = vmul.f32 0.2, %v1056_v3  ;;  %2145 = vtanh.f32 %v803_v22  ;;  %v772_v32 = vmul.f32 0.5, %v2467_v42  ;;  %v804_v36 = vmul.f32 0.5, %v2469_v53 }
 0x17c   :  { %1957 = vst [vmem:[#allocation7 + $0xd0] sm:$0xff] %v1905_v37   ;;  %vm1089_vm14 = vcmp.ge.f32.partialorder %v1025_v44, 0.0  ;;  %v1153_v12 = vmul.f32 0.2, %v1025_v44  ;;  %v1057_v8 = vmul.f32 %v993_v11, %v2443_v27  ;;  %v1216_v34 = vsel %vm1088_vm12, %v1024_v24, %v1152_v29  ;;  %v2517_v60 = vpop.f32.mrf.mxu1 }
 0x17d   :  { %v898_v33 = vmul.f32 0.5, %v2140_v26  ;;  %2147 = vtanh.f32 %v772_v32  ;;  %v773_v31 = vmul.f32 0.5, %v2478_v19  ;;  %v805_v50 = vmul.f32 0.5, %v2480_v17  ;;  %v2515_v26 = vpop.f32.mrf.mxu0 }
 0x17e   :  { %v1217_v45 = vsel %vm1089_vm14, %v1025_v44, %v1153_v12  ;;  %vm1121_vm15 = vcmp.ge.f32.partialorder %v1057_v8, 0.0  ;;  %v1185_v47 = vmul.f32 0.2, %v1057_v8  ;;  %v1248_v42 = vsel %vm1120_vm13, %v1056_v3, %v1184_v38 }
 0x17f   :  { %v1830_v55 = vpack.c.bf16 %v1217_v45, %v1216_v34  ;;  %v930_v51 = vmul.f32 0.5, %v2142_v57  ;;  %2149 = vtanh.f32 %v804_v36  ;;  %v774_v27 = vmul.f32 0.5, %v2486_v41  ;;  %v583_v41 = vpop.f32.mrf.mxu0 }
 0x180   :  { %v1249_v58 = vsel %vm1121_vm15, %v1057_v8, %v1185_v47  ;;  %v806_v53 = vmul.f32 0.5, %v2488_v4  ;;  %2151 = vtanh.f32 %v773_v31  ;;  %v962_v1 = vadd.f32 0.5, %v898_v33  ;;  %v743_v4 = vpop.f32.mrf.mxu1 }
 0x181   :  { %1942 = vst [vmem:[#allocation7 + $0x58] sm:$0xff] %v1830_v55   ;;  %v1910_v19 = vpack.c.bf16 %v1249_v58, %v1248_v42  ;;  %2153 = vtanh.f32 %v805_v50  ;;  %v775_v17 = vmul.f32 0.5, %v573_v52  ;;  %v807_v62 = vmul.f32 0.5, %v733_v15 }
 0x182   :  { %2155 = vtanh.f32 %v774_v27  ;;  %v776_v57 = vmul.f32 0.5, %v579_v21  ;;  %v994_v5 = vadd.f32 0.5, %v930_v51  ;;  %v808_v6 = vmul.f32 0.5, %v739_v40 }
 0x183   :  { %1958 = vst [vmem:[#allocation7 + $0xd8] sm:$0xff] %v1910_v19   ;;  %2157 = vtanh.f32 %v806_v53  ;;  %v1026_v2 = vmul.f32 %v962_v1, %v2445_v0  ;;  %v777_v49 = vmul.f32 0.5, %v583_v41  ;;  %v809_v15 = vmul.f32 0.5, %v743_v4 }
 0x184   :  { %2159 = vtanh.f32 %v775_v17  ;;  %v1058_v16 = vmul.f32 %v994_v5, %v2447_v56 }
 0x185   :  { %2161 = vtanh.f32 %v807_v62  ;;  %v1154_v10 = vmul.f32 0.2, %v1026_v2  ;;  %vm1090_vm0 = vcmp.ge.f32.partialorder %v1026_v2, 0.0 }
 0x186   :  { %v2144_v24 = vpop.eup %2143  ;;  %2163 = vtanh.f32 %v776_v57  ;;  %v1186_v28 = vmul.f32 0.2, %v1058_v16  ;;  %vm1122_vm1 = vcmp.ge.f32.partialorder %v1058_v16, 0.0 }
 0x187   :  { %v899_v52 = vmul.f32 0.5, %v2144_v24  ;;  %2165 = vtanh.f32 %v808_v6  ;;  %v1218_v29 = vsel %vm1090_vm0, %v1026_v2, %v1154_v10 }
 0x188   :  { %v2146_v14 = vpop.eup %2145  ;;  %2167 = vtanh.f32 %v777_v49  ;;  %v1250_v21 = vsel %vm1122_vm1, %v1058_v16, %v1186_v28 }
 0x189   :  { %v931_v23 = vmul.f32 0.5, %v2146_v14  ;;  %v963_v3 = vadd.f32 0.5, %v899_v52  ;;  %2169 = vtanh.f32 %v809_v15 }
 0x18a   :  { %v2148_v54 = vpop.eup %2147 }
 0x18b   :  { %v995_v22 = vadd.f32 0.5, %v931_v23  ;;  %v900_v46 = vmul.f32 0.5, %v2148_v54  ;;  %v1027_v0 = vmul.f32 %v963_v3, %v2450_v61 }
 0x18c   :  { %v2150_v25 = vpop.eup %2149 }
 0x18d   :  { %v1059_v63 = vmul.f32 %v995_v22, %v2452_v18  ;;  %v964_v56 = vadd.f32 0.5, %v900_v46  ;;  %v2152_v37 = vpop.eup %2151  ;;  %vm1091_vm2 = vcmp.ge.f32.partialorder %v1027_v0, 0.0  ;;  %v1155_v44 = vmul.f32 0.2, %v1027_v0 }
 0x18e   :  { %v932_v11 = vmul.f32 0.5, %v2150_v25  ;;  %v2154_v38 = vpop.eup %2153  ;;  %v901_v8 = vmul.f32 0.5, %v2152_v37 }
 0x18f   :  { %vm1123_vm3 = vcmp.ge.f32.partialorder %v1059_v63, 0.0  ;;  %v1187_v32 = vmul.f32 0.2, %v1059_v63  ;;  %v1028_v12 = vmul.f32 %v964_v56, %v2461_v39  ;;  %v2156_v36 = vpop.eup %2155  ;;  %v1219_v61 = vsel %vm1091_vm2, %v1027_v0, %v1155_v44 }
 0x190   :  { %v996_v34 = vadd.f32 0.5, %v932_v11  ;;  %v933_v33 = vmul.f32 0.5, %v2154_v38  ;;  %v2158_v31 = vpop.eup %2157  ;;  %v1835_v40 = vpack.c.bf16 %v1219_v61, %v1218_v29  ;;  %v965_v55 = vadd.f32 0.5, %v901_v8 }
 0x191   :  { %v1251_v18 = vsel %vm1123_vm3, %v1059_v63, %v1187_v32  ;;  %vm1092_vm4 = vcmp.ge.f32.partialorder %v1028_v12, 0.0  ;;  %v1156_v45 = vmul.f32 0.2, %v1028_v12  ;;  %v2160_v47 = vpop.eup %2159  ;;  %v902_v27 = vmul.f32 0.5, %v2156_v36 }
 0x192   :  { %v1915_v50 = vpack.c.bf16 %v1251_v18, %v1250_v21  ;;  %v1060_v42 = vmul.f32 %v996_v34, %v2463_v35  ;;  %v997_v51 = vadd.f32 0.5, %v933_v33  ;;  %v2162_v58 = vpop.eup %2161  ;;  %1943 = vst [vmem:[#allocation7 + $0x60] sm:$0xff] %v1835_v40   ;;  %v934_v53 = vmul.f32 0.5, %v2158_v31 }
 0x193   :  { %v1220_v39 = vsel %vm1092_vm4, %v1028_v12, %v1156_v45  ;;  %v903_v19 = vmul.f32 0.5, %v2160_v47  ;;  %v2164_v1 = vpop.eup %2163  ;;  %v1029_v62 = vmul.f32 %v965_v55, %v2472_v43  ;;  %v966_v6 = vadd.f32 0.5, %v902_v27 }
 0x194   :  { %1959 = vst [vmem:[#allocation7 + $0xe0] sm:$0xff] %v1915_v50   ;;  %vm1124_vm5 = vcmp.ge.f32.partialorder %v1060_v42, 0.0  ;;  %v1188_v17 = vmul.f32 0.2, %v1060_v42  ;;  %v1061_v57 = vmul.f32 %v997_v51, %v2474_v48  ;;  %v2166_v5 = vpop.eup %2165  ;;  %v998_v41 = vadd.f32 0.5, %v934_v53 }
 0x195   :  { %v967_v35 = vadd.f32 0.5, %v903_v19  ;;  %v935_v4 = vmul.f32 0.5, %v2162_v58  ;;  %vm1093_vm6 = vcmp.ge.f32.partialorder %v1029_v62, 0.0  ;;  %v1157_v24 = vmul.f32 0.2, %v1029_v62  ;;  %v2168_v15 = vpop.eup %2167 }
 0x196   :  { %v1252_v2 = vsel %vm1124_vm5, %v1060_v42, %v1188_v17  ;;  %vm1125_vm7 = vcmp.ge.f32.partialorder %v1061_v57, 0.0  ;;  %v1189_v49 = vmul.f32 0.2, %v1061_v57  ;;  %v1030_v14 = vmul.f32 %v966_v6, %v2482_v7  ;;  %v2170_v10 = vpop.eup %2169 }
 0x197   :  { %v1062_v16 = vmul.f32 %v998_v41, %v2484_v30  ;;  %v1031_v52 = vmul.f32 %v967_v35, %v2493_v9  ;;  %v1221_v43 = vsel %vm1093_vm6, %v1029_v62, %v1157_v24  ;;  %v999_v23 = vadd.f32 0.5, %v935_v4 }
 0x198   :  { %v904_v48 = vmul.f32 0.5, %v2164_v1  ;;  %v936_v54 = vmul.f32 0.5, %v2166_v5  ;;  %v1840_v3 = vpack.c.bf16 %v1221_v43, %v1220_v39  ;;  %v1253_v22 = vsel %vm1125_vm7, %v1061_v57, %v1189_v49 }
 0x199   :  { %vm1094_vm8 = vcmp.ge.f32.partialorder %v1030_v14, 0.0  ;;  %v1158_v46 = vmul.f32 0.2, %v1030_v14  ;;  %v1920_v28 = vpack.c.bf16 %v1253_v22, %v1252_v2  ;;  %vm1126_vm9 = vcmp.ge.f32.partialorder %v1062_v16, 0.0 }
 0x19a   :  { %vm1095_vm10 = vcmp.ge.f32.partialorder %v1031_v52, 0.0  ;;  %1944 = vst [vmem:[#allocation7 + $0x68] sm:$0xff] %v1840_v3   ;;  %v1190_v0 = vmul.f32 0.2, %v1062_v16  ;;  %v1159_v7 = vmul.f32 0.2, %v1031_v52  ;;  %v1063_v30 = vmul.f32 %v999_v23, %v2495_v59 }
 0x19b   :  { %v968_v25 = vadd.f32 0.5, %v904_v48  ;;  %1960 = vst [vmem:[#allocation7 + $0xe8] sm:$0xff] %v1920_v28   ;;  %v1222_v9 = vsel %vm1094_vm8, %v1030_v14, %v1158_v46  ;;  %v1000_v63 = vadd.f32 0.5, %v936_v54  ;;  %v905_v56 = vmul.f32 0.5, %v2168_v15 }
 0x19c   :  { %v937_v37 = vmul.f32 0.5, %v2170_v10  ;;  %v1223_v29 = vsel %vm1095_vm10, %v1031_v52, %v1159_v7  ;;  %vm1127_vm11 = vcmp.ge.f32.partialorder %v1063_v30, 0.0  ;;  %v1191_v44 = vmul.f32 0.2, %v1063_v30 }
 0x19d   :  { %v1032_v11 = vmul.f32 %v968_v25, %v2502_v13  ;;  %v1845_v38 = vpack.c.bf16 %v1223_v29, %v1222_v9  ;;  %v1064_v32 = vmul.f32 %v1000_v63, %v2504_v20  ;;  %v969_v12 = vadd.f32 0.5, %v905_v56 }
 0x19e   :  { %v1001_v8 = vadd.f32 0.5, %v937_v37  ;;  %v1254_v36 = vsel %vm1126_vm9, %v1062_v16, %v1190_v0  ;;  %v1255_v21 = vsel %vm1127_vm11, %v1063_v30, %v1191_v44 }
 0x19f   :  { %1945 = vst [vmem:[#allocation7 + $0x70] sm:$0xff] %v1845_v38   ;;  %v1925_v59 = vpack.c.bf16 %v1255_v21, %v1254_v36  ;;  %v1160_v61 = vmul.f32 0.2, %v1032_v11  ;;  %v1033_v34 = vmul.f32 %v969_v12, %v2515_v26  ;;  %vm1096_vm12 = vcmp.ge.f32.partialorder %v1032_v11, 0.0 }
 0x1a0   :  { %v1192_v33 = vmul.f32 0.2, %v1064_v32  ;;  %v1065_v31 = vmul.f32 %v1001_v8, %v2517_v60  ;;  %vm1128_vm13 = vcmp.ge.f32.partialorder %v1064_v32, 0.0 }
 0x1a1   :  { %1961 = vst [vmem:[#allocation7 + $0xf0] sm:$0xff] %v1925_v59   ;;  %vm1097_vm14 = vcmp.ge.f32.partialorder %v1033_v34, 0.0  ;;  %v1161_v13 = vmul.f32 0.2, %v1033_v34  ;;  %v1224_v40 = vsel %vm1096_vm12, %v1032_v11, %v1160_v61 }
 0x1a2   :  { %vm1129_vm15 = vcmp.ge.f32.partialorder %v1065_v31, 0.0  ;;  %v1193_v20 = vmul.f32 0.2, %v1065_v31  ;;  %v1256_v45 = vsel %vm1128_vm13, %v1064_v32, %v1192_v33 }
 0x1a3   :  { %v1225_v18 = vsel %vm1097_vm14, %v1033_v34, %v1161_v13 }
 0x1a4   :  { %v1850_v47 = vpack.c.bf16 %v1225_v18, %v1224_v40  ;;  %v1257_v50 = vsel %vm1129_vm15, %v1065_v31, %v1193_v20 }
 0x1a5   :  { %v1930_v42 = vpack.c.bf16 %v1257_v50, %v1256_v45 }
 0x1a6   :  { %1946 = vst [vmem:[#allocation7 + $0x78] sm:$0xff] %v1850_v47  }
 0x1a7   :  { %1962 = vst [vmem:[#allocation7 + $0xf8] sm:$0xff] %v1930_v42  }
 0x1a8   :  { %2222 = shalt.err (!%p2219_p0)
}
 0x1a9   :  { %1589 = dma.vmem_to_hbm [thread:$0]  %s1584_s1, 4096, %s2544_s2, [#allocation4], %s2238_s12, %s2238_s12, %s2239_s13  }
 0x1aa   :  { %2235 = dma.done.wait [#allocation4], 4096  }
 0x1ab   :  { %2236 = vsyncadd [#allocation4], 4294963200 }
 0x1ac   :  { %1593 = vsyncpa [#allocation3], 1 }
 0x1ad   :  { %1594 = vsyncpa [#allocation6], 1 }
 0x1ae   :  { %1595 = vsyncpa [#allocation4], 1 }

</bundles_post_ra>
